<compile_context>
chip_gen: v7x
topology: tpu7x:2x2x1
jax: 0.10.0
libtpu: 0.0.40
codegen_flags: <defaults>
</compile_context>

<pallas_src>
import numpy as np
import jax
import jax.numpy as jnp
from jax.experimental import pallas as pl
from jax.experimental.pallas import tpu as pltpu


# ----------------------- deterministic parameter setup (numpy glue) -----------------------

def definePsf(sptial_grid, temprol_grid, slope):
    """Port of the classic LCT definePsf (O'Toole et al.). Returns (2T, 2H, 2W)."""
    U, V = sptial_grid, temprol_grid
    x = np.linspace(-1.0, 1.0, 2 * U)
    z = np.linspace(0.0, 2.0, 2 * V)
    grid_z, grid_y, grid_x = np.meshgrid(z, x, x, indexing="ij")
    psf = np.abs(((4.0 * slope) ** 2) * (grid_x ** 2 + grid_y ** 2) - grid_z)
    psf = (psf == psf.min(axis=0, keepdims=True)).astype(np.float64)
    psf = psf / np.sum(psf[:, U - 1, U - 1])
    psf = psf / np.linalg.norm(psf.ravel())
    psf = np.roll(psf, shift=(U, U), axis=(1, 2))
    return psf


def resamplingOperator(M):
    """Port of the LCT resamplingOperator. Returns (mtx_MxM, mtxi_MxM) float32."""
    row, col = M * M, M
    mtx = np.zeros((row, col), dtype=np.float64)
    x = np.arange(1, row + 1, dtype=np.float64)
    mtx[np.arange(row), np.ceil(np.sqrt(x)).astype(np.int64) - 1] = 1.0
    mtx = mtx / np.sqrt(x)[:, None]
    mtxi = mtx.T.copy()
    K = int(round(np.log2(M)))
    for _ in range(K):
        mtx = 0.5 * (mtx[0::2, :] + mtx[1::2, :])
        mtxi = 0.5 * (mtxi[:, 0::2] + mtxi[:, 1::2])
    return mtx.astype(np.float32), mtxi.astype(np.float32)


def make_lct_params(spatial=16, crop=16, bin_len=0.01, wall_size=2.0, snr=0.1,
                    material="diffuse"):
    c = 3.0e8
    width = wall_size / 2.0
    bin_resolution = bin_len / c
    trange = crop * c * bin_resolution
    slope = width / trange

    gridz = (np.arange(crop, dtype=np.float32) / (crop - 1)).reshape(crop, 1)

    psf = definePsf(spatial, crop, slope)
    # rfftn half-spectrum: identical to the corresponding half of fftn(psf) since psf is real,
    # and the conj/(1/snr+|F|^2) map preserves Hermitian symmetry -> irfftn of the half
    # product equals ifftn(full product).real exactly.
    fpsf = np.fft.rfftn(psf)                                     # (2T, 2H, W+1)
    invpsf = np.conjugate(fpsf) / (1.0 / snr + np.real(fpsf) ** 2 + np.imag(fpsf) ** 2)
    invpsf_real = np.real(invpsf).astype(np.float32)
    invpsf_imag = np.imag(invpsf).astype(np.float32)

    mtx, mtxi = resamplingOperator(crop)

    # Fold the diffuse/specular gridz scaling into the first resampling matrix
    # (constant diagonal fold: mtx @ diag(g^p) == mtx * g^p[None, :]).
    expo = 4 if material == "diffuse" else 2
    g = gridz.astype(np.float32) ** expo                          # (T, 1)
    mtx_scaled = (mtx * g.reshape(1, -1)).astype(np.float32)      # (T, T)

    # learnable parameter from __init__: zeros of shape (2, 2T, 2H, 2W)
    learnable_w = np.zeros((2, 2 * crop, 2 * spatial, 2 * spatial), dtype=np.float32)

    return dict(
        gridz=jnp.asarray(gridz),
        invpsf_real=jnp.asarray(invpsf_real),     # (2T, 2H, W+1) half-spectrum
        invpsf_imag=jnp.asarray(invpsf_imag),
        mtx_scaled=jnp.asarray(mtx_scaled),
        mtxi=jnp.asarray(mtxi),
        learnable_w=jnp.asarray(learnable_w),
    )


# ----------------------------------- Pallas kernels ----------------------------------------

def _resample_kernel(mtx_ref, x_ref, o_ref):
    # mtx: (T,T), x: (bd_blk, T, HW) -> o: (bd_blk, T, HW).  Static unroll over the
    # batched sub-volumes in this block (bd_blk==1 at small B*D to keep >=2 parallel
    # grid steps for v7x's two TensorCores).
    mtx = mtx_ref[...]
    for b in range(x_ref.shape[0]):
        o_ref[b] = jnp.dot(mtx, x_ref[b], preferred_element_type=jnp.float32)


def _inv_filter_kernel(dr_ref, di_ref, wr_ref, wi_ref, or_ref, oi_ref):
    # Lane-dense complex multiply of the data half-spectrum with the inverse PSF.
    # data blocks (1, r_blk, L), filter blocks (r_blk, L); broadcast over leading 1.
    dr = dr_ref[...]
    di = di_ref[...]
    wr = wr_ref[...]
    wi = wi_ref[...]
    or_ref[...] = dr * wr - di * wi
    oi_ref[...] = dr * wi + di * wr


# ---------------------------------- pallas_call wrappers ------------------------------------

def resample(mtx, data_bd_t_hw, bd_blk=None):
    BD, T, HW = data_bd_t_hw.shape
    if bd_blk is None:
        # Batch volumes per grid step only when there are enough of them; always keep
        # >=2 parallel grid steps so v7x can shard across its two TensorCores.
        bd_blk = 2 if (BD >= 4 and BD % 2 == 0) else 1
    assert BD % bd_blk == 0
    grid = (BD // bd_blk,)
    return pl.pallas_call(
        _resample_kernel,
        out_shape=jax.ShapeDtypeStruct((BD, T, HW), jnp.float32),
        grid=grid,
        in_specs=[
            pl.BlockSpec((T, T), lambda i: (0, 0)),
            pl.BlockSpec((bd_blk, T, HW), lambda i: (i, 0, 0)),
        ],
        out_specs=pl.BlockSpec((bd_blk, T, HW), lambda i: (i, 0, 0)),
        compiler_params=pltpu.CompilerParams(dimension_semantics=("parallel",)),
    )(mtx, data_bd_t_hw)


def apply_inv_filter(dr, di, wr, wi, r_blk=None):
    BD, R, L = dr.shape
    assert wr.shape == (R, L) and wi.shape == (R, L)
    if r_blk is None:
        # Tile spectrum rows for big volumes (keeps blocks small for v7x's 64 MiB VMEM);
        # at small sizes take the whole per-volume spectrum in one block.
        r_blk = 1024 if (R > 2048 and R % 1024 == 0) else R
    grid = (BD, R // r_blk)
    data_spec = pl.BlockSpec((1, r_blk, L), lambda b, r: (b, r, 0))
    filt_spec = pl.BlockSpec((r_blk, L), lambda b, r: (r, 0))
    out_sds = jax.ShapeDtypeStruct((BD, R, L), jnp.float32)
    return pl.pallas_call(
        _inv_filter_kernel,
        out_shape=(out_sds, out_sds),
        grid=grid,
        in_specs=[data_spec, data_spec, filt_spec, filt_spec],
        out_specs=(data_spec, data_spec),
        compiler_params=pltpu.CompilerParams(
            dimension_semantics=("parallel", "parallel")),
    )(dr, di, wr, wi)


def _spec_flat_shape(T2, H2, Wr):
    """Pick a lane-dense (rows, lanes) factorization of the flattened half-spectrum."""
    total = T2 * H2 * Wr
    if total % 128 == 0:
        return total // 128, 128        # fully unmasked 128-lane stores
    return T2, H2 * Wr                  # fallback: still >4 vregs wide


# ------------------------------------- forward pass ----------------------------------------

def lct_forward(x_bdthw, params, crop, spatial, material="diffuse"):
    B, D, T, H, W = x_bdthw.shape
    assert T == crop and H == spatial and W == spatial and H == W
    assert material == "diffuse"
    BD = B * D
    HW = H * W
    T2, H2, W2 = 2 * T, 2 * H, 2 * W
    Wr = W + 1

    # TODO(synk): the reference adds `learnanle_w` via a window reshape that uses undefined
    # attributes (self.scale / self.windowsize) and shape-incompatible broadcasting; the
    # parameter is zero-initialized in __init__, so the add is an identity and is skipped
    # here (params["learnable_w"] is kept for completeness).
    data = x_bdthw.reshape(BD, T, HW).astype(jnp.float32)

    # gridz**4 scaling is pre-folded into mtx_scaled; temporal resampling matmul (MXU).
    tmp = resample(params["mtx_scaled"], data)

    # Per-volume real 3D FFT over (2T, 2H, 2W); zero-padding is done inside rfftn via s=,
    # which removes the explicit padded-array pass; rfft halves the spectrum.
    # NOTE: the reference torch code calls fftn over all 4 dims (incl. the batch axis);
    # classic LCT and the per-batch invpsf broadcast imply a per-volume 3D transform,
    # which is what is implemented here (identical whenever B*D == 1).
    datafre = jnp.fft.rfftn(tmp.reshape(BD, T, H, W), s=(T2, H2, W2), axes=(1, 2, 3))

    R, L = _spec_flat_shape(T2, H2, Wr)
    dr = datafre.real.astype(jnp.float32).reshape(BD, R, L)
    di = datafre.imag.astype(jnp.float32).reshape(BD, R, L)
    wr = params["invpsf_real"].reshape(R, L)
    wi = params["invpsf_imag"].reshape(R, L)

    # complex multiply with inverse PSF -- Pallas / VPU, lane-dense blocks
    re_r, re_i = apply_inv_filter(dr, di, wr, wi)
    refre = jax.lax.complex(re_r, re_i).reshape(BD, T2, H2, Wr)

    re = jnp.fft.irfftn(refre, s=(T2, H2, W2), axes=(1, 2, 3))
    vol = re[:, :T, :H, :W].astype(jnp.float32).reshape(BD, T, HW)

    # mtxi_MxM @ volume  -- Pallas / MXU (same resample kernel)
    vol = resample(params["mtxi"], vol)
    return vol.reshape(B, D, T, H, W)


# ---------------------------------------- main ----------------------------------------------

if __name__ == "__main__":
    spatial, crop = 16, 16      # small, power-of-2 crop as required by the module
    B, D = 1, 2

    params = make_lct_params(spatial=spatial, crop=crop, bin_len=0.01, wall_size=2.0)

    key = jax.random.PRNGKey(0)
    x = jax.random.normal(key, (B, D, crop, spatial, spatial), dtype=jnp.float32)

    fwd = jax.jit(lambda inp: lct_forward(inp, params, crop, spatial))
    out = fwd(x)
    jax.block_until_ready(out)

    assert out.shape == (B, D, crop, spatial, spatial)
    assert out.dtype == jnp.float32
    print("KERNEL_OK")
</pallas_src>

<mosaic_0001>
module attributes {stable_mosaic.version = 11 : i64} {
  func.func @_resample_kernel(%arg0: i32, %arg1: memref<16x16xf32, #tpu.memory_space<vmem>>, %arg2: memref<1x16x256xf32, #tpu.memory_space<vmem>>, %arg3: memref<1x16x256xf32, #tpu.memory_space<vmem>>) attributes {dimension_semantics = [#tpu.dimension_semantics<parallel>], iteration_bounds = array<i64: 2>, scalar_prefetch = 0 : i64, scratch_operands = 0 : i64, tpu.core_type = #tpu.core_type<tc>, window_params = [{pipeline_mode = #tpu.pipeline_mode<synchronous>, transform_indices = @transform_0, window_bounds = array<i64: 16, 16>}, {transform_indices = @transform_1, window_bounds = array<i64: 1, 16, 256>}, {transform_indices = @transform_2, window_bounds = array<i64: 1, 16, 256>}]} {
    %c0 = arith.constant 0 : index
    %c0_0 = arith.constant 0 : index
    %0 = vector.load %arg1[%c0, %c0_0] : memref<16x16xf32, #tpu.memory_space<vmem>>, vector<16x16xf32>
    %c0_1 = arith.constant 0 : index
    %c0_2 = arith.constant 0 : index
    %c0_3 = arith.constant 0 : index
    %1 = vector.load %arg2[%c0_1, %c0_2, %c0_3] : memref<1x16x256xf32, #tpu.memory_space<vmem>>, vector<1x16x256xf32>
    %2 = vector.shape_cast %1 : vector<1x16x256xf32> to vector<16x256xf32>
    %cst = arith.constant dense<0.000000e+00> : vector<16x256xf32>
    %3 = tpu.matmul %0, %2, %cst {dimension_numbers = #tpu.dot_dimension_numbers<[1], [0], [0], [1], [0, 0, 1, 1], [], []>} : vector<16x16xf32>, vector<16x256xf32>, vector<16x256xf32> -> vector<16x256xf32>
    %c0_4 = arith.constant 0 : index
    %c0_5 = arith.constant 0 : index
    %c0_6 = arith.constant 0 : index
    %4 = vector.load %arg3[%c0_4, %c0_5, %c0_6] : memref<1x16x256xf32, #tpu.memory_space<vmem>>, vector<1x16x256xf32>
    %5 = vector.shape_cast %4 : vector<1x16x256xf32> to vector<16x256xf32>
    %6 = vector.shape_cast %3 : vector<16x256xf32> to vector<1x16x256xf32>
    tpu.vector_store %arg3[%c0_4, %c0_5, %c0_6], %6 {strides = array<i32>} : memref<1x16x256xf32, #tpu.memory_space<vmem>>, vector<1x16x256xf32>,
    return
  }
  func.func @transform_0(%arg0: i32) -> (i32, i32) {
    %c0_i32 = arith.constant 0 : i32
    %c0_i32_0 = arith.constant 0 : i32
    %c0_i32_1 = arith.constant 0 : i32
    return %c0_i32, %c0_i32_0 : i32, i32
  }
  func.func @transform_1(%arg0: i32) -> (i32, i32, i32) {
    %c0_i32 = arith.constant 0 : i32
    %c0_i32_0 = arith.constant 0 : i32
    %c0_i32_1 = arith.constant 0 : i32
    return %arg0, %c0_i32, %c0_i32_0 : i32, i32, i32
  }
  func.func @transform_2(%arg0: i32) -> (i32, i32, i32) {
    %c0_i32 = arith.constant 0 : i32
    %c0_i32_0 = arith.constant 0 : i32
    %c0_i32_1 = arith.constant 0 : i32
    return %arg0, %c0_i32, %c0_i32_0 : i32, i32, i32
  }
}

module attributes {stable_mosaic.version = 11 : i64} {
  func.func @_inv_filter_kernel(%arg0: i32, %arg1: i32, %arg2: memref<1x136x128xf32, #tpu.memory_space<vmem>>, %arg3: memref<1x136x128xf32, #tpu.memory_space<vmem>>, %arg4: memref<136x128xf32, #tpu.memory_space<vmem>>, %arg5: memref<136x128xf32, #tpu.memory_space<vmem>>, %arg6: memref<1x136x128xf32, #tpu.memory_space<vmem>>, %arg7: memref<1x136x128xf32, #tpu.memory_space<vmem>>) attributes {dimension_semantics = [#tpu.dimension_semantics<parallel>, #tpu.dimension_semantics<parallel>], iteration_bounds = array<i64: 2, 1>, scalar_prefetch = 0 : i64, scratch_operands = 0 : i64, tpu.core_type = #tpu.core_type<tc>, window_params = [{transform_indices = @transform_0, window_bounds = array<i64: 1, 136, 128>}, {transform_indices = @transform_1, window_bounds = array<i64: 1, 136, 128>}, {transform_indices = @transform_2, window_bounds = array<i64: 136, 128>}, {transform_indices = @transform_3, window_bounds = array<i64: 136, 128>}, {transform_indices = @transform_4, window_bounds = array<i64: 1, 136, 128>}, {transform_indices = @transform_5, window_bounds = array<i64: 1, 136, 128>}]} {
    %c0 = arith.constant 0 : index
    %c0_0 = arith.constant 0 : index
    %c0_1 = arith.constant 0 : index
    %0 = vector.load %arg2[%c0, %c0_0, %c0_1] : memref<1x136x128xf32, #tpu.memory_space<vmem>>, vector<1x136x128xf32>
    %c0_2 = arith.constant 0 : index
    %c0_3 = arith.constant 0 : index
    %c0_4 = arith.constant 0 : index
    %1 = vector.load %arg3[%c0_2, %c0_3, %c0_4] : memref<1x136x128xf32, #tpu.memory_space<vmem>>, vector<1x136x128xf32>
    %c0_5 = arith.constant 0 : index
    %c0_6 = arith.constant 0 : index
    %2 = vector.load %arg4[%c0_5, %c0_6] : memref<136x128xf32, #tpu.memory_space<vmem>>, vector<136x128xf32>
    %c0_7 = arith.constant 0 : index
    %c0_8 = arith.constant 0 : index
    %3 = vector.load %arg5[%c0_7, %c0_8] : memref<136x128xf32, #tpu.memory_space<vmem>>, vector<136x128xf32>
    %4 = vector.shape_cast %2 : vector<136x128xf32> to vector<1x136x128xf32>
    %5 = arith.mulf %0, %4 : vector<1x136x128xf32>
    %6 = vector.shape_cast %3 : vector<136x128xf32> to vector<1x136x128xf32>
    %7 = arith.mulf %1, %6 : vector<1x136x128xf32>
    %8 = arith.subf %5, %7 : vector<1x136x128xf32>
    %c0_9 = arith.constant 0 : index
    %c0_10 = arith.constant 0 : index
    %c0_11 = arith.constant 0 : index
    %9 = vector.load %arg6[%c0_9, %c0_10, %c0_11] : memref<1x136x128xf32, #tpu.memory_space<vmem>>, vector<1x136x128xf32>
    tpu.vector_store %arg6[%c0_9, %c0_10, %c0_11], %8 {strides = array<i32>} : memref<1x136x128xf32, #tpu.memory_space<vmem>>, vector<1x136x128xf32>,
    %10 = vector.shape_cast %3 : vector<136x128xf32> to vector<1x136x128xf32>
    %11 = arith.mulf %0, %10 : vector<1x136x128xf32>
    %12 = vector.shape_cast %2 : vector<136x128xf32> to vector<1x136x128xf32>
    %13 = arith.mulf %1, %12 : vector<1x136x128xf32>
    %14 = arith.addf %11, %13 : vector<1x136x128xf32>
    %c0_12 = arith.constant 0 : index
    %c0_13 = arith.constant 0 : index
    %c0_14 = arith.constant 0 : index
    %15 = vector.load %arg7[%c0_12, %c0_13, %c0_14] : memref<1x136x128xf32, #tpu.memory_space<vmem>>, vector<1x136x128xf32>
    tpu.vector_store %arg7[%c0_12, %c0_13, %c0_14], %14 {strides = array<i32>} : memref<1x136x128xf32, #tpu.memory_space<vmem>>, vector<1x136x128xf32>,
    return
  }
  func.func @transform_0(%arg0: i32, %arg1: i32) -> (i32, i32, i32) {
    %c0_i32 = arith.constant 0 : i32
    %c0_i32_0 = arith.constant 0 : i32
    return %arg0, %arg1, %c0_i32 : i32, i32, i32
  }
  func.func @transform_1(%arg0: i32, %arg1: i32) -> (i32, i32, i32) {
    %c0_i32 = arith.constant 0 : i32
    %c0_i32_0 = arith.constant 0 : i32
    return %arg0, %arg1, %c0_i32 : i32, i32, i32
  }
  func.func @transform_2(%arg0: i32, %arg1: i32) -> (i32, i32) {
    %c0_i32 = arith.constant 0 : i32
    %c0_i32_0 = arith.constant 0 : i32
    return %arg1, %c0_i32 : i32, i32
  }
  func.func @transform_3(%arg0: i32, %arg1: i32) -> (i32, i32) {
    %c0_i32 = arith.constant 0 : i32
    %c0_i32_0 = arith.constant 0 : i32
    return %arg1, %c0_i32 : i32, i32
  }
  func.func @transform_4(%arg0: i32, %arg1: i32) -> (i32, i32, i32) {
    %c0_i32 = arith.constant 0 : i32
    %c0_i32_0 = arith.constant 0 : i32
    return %arg0, %arg1, %c0_i32 : i32, i32, i32
  }
  func.func @transform_5(%arg0: i32, %arg1: i32) -> (i32, i32, i32) {
    %c0_i32 = arith.constant 0 : i32
    %c0_i32_0 = arith.constant 0 : i32
    return %arg0, %arg1, %c0_i32 : i32, i32, i32
  }
}

</mosaic_0001>

<bundles_post_ra>
// kernel: _lambda_.3
= control target key start
LH: loop header
LB: loop body
LE: loop exit
PB: predicated region body
PF: predicated region fallthrough
CT: control target
= control target key end

     0   :  { %s347_s9 = smov 0   ;;  %s370_s0 = inlined_call_operand.vmem [shape: f32[16,16], index: 0, kind: input, shape index: {}]   ;;  %s371_s1 = inlined_call_operand.vmem [shape: f32[2,16,256], index: 1, kind: input, shape index: {}]   ;;  %s372_s2 = inlined_call_operand.vmem [shape: f32[2,16,256], index: 2, kind: output, shape index: {}]  }
   0x1 LB: > { %s293_s10 = sadd.s32 4294967295, %s329_s9   ;;  %p297_p0 = scmp.ge.s32.totalorder %s329_s9, 1  ;;  %s329_s9 = sphi %s347_s9, %s12_s9  }
   0x2   : > { %p112_p1 = scmp.lt.s32.totalorder %s329_s9, 3 }
   0x4   : > { %p113_p2 = pnand %p297_p0, %p112_p1 }
   0x5   : > { %p134_p3 = scmp.lt.s32.totalorder (!%p113_p2), %s293_s10, 1  ;;  %v331_v0 = vmov (!%p113_p2), 0.0   ;;  %v144_v7 = vld [vmem:[%s370_s0] sm:$0xff] (!%p113_p2)  ;;  %vm150_vm0 = vcmask (!%p113_p2), 130048   ;;  %v145_v8 = vld [vmem:[%s370_s0 + $0x8] sm:$0xff] (!%p113_p2) }
   0x6   : > { %116 = sbr.rel (%p113_p2) target bundleno = 237 (0xed), region = 28  ;;  %221 = vmatprep.mubr.f32.mxu0 (!%p113_p2), %v331_v0  ;;  %227 = vmatprep.mubr.f32.mxu1 (!%p113_p2), %v331_v0 }
   0xd   : > { %s374_s10 = smov (!%p134_p3, %s293_s10), 1 }
   0xe   : > { %s306_s11 = sshll.u32 %s374_s10, 5 }
   0xf   : > { %s138_s14 = scalar_lea.vmem %s371_s1, %s306_s11  ;;  %s143_s21 = scalar_lea.vmem %s372_s2, %s306_s11 }
  0x10   : > { %v147_v1 = vld [vmem:[%s138_s14 + $0x8] sm:$0xff]  ;;  %v149_v2 = vld [vmem:[%s138_s14 + $0x18] sm:$0xff]  ;;  %v146_v3 = vld [vmem:[%s138_s14] sm:$0xff] }
  0x11   : > { %v308_v4 = vpack.c.bf16 %v149_v2, %v147_v1  ;;  %v148_v5 = vld [vmem:[%s138_s14 + $0x10] sm:$0xff] }
  0x12   : > { %v310_v6 = vpack.c.bf16 %v148_v5, %v146_v3 }
  0x13   : > { %309 = vmatprep.subr.bf16.mxu0 %v308_v4  ;;  %312 = vmatprep.subr.bf16.mxu1 %v308_v4 }
  0x14   : > { %311 = vmatpush1.bf16.msra.mxu0 %v310_v6  ;;  %313 = vmatpush1.bf16.msra.mxu1 %v310_v6 }
  0x17   : > { %302 = vmatmul.mubr.msk.f32.vlgmr.msra.gmra.mrb[0].mxu0 %vm150_vm0, %v144_v7  ;;  %303 = vmatmul.mubr.msk.f32.vlgmr.msra.gmra.mrb[0].mxu1 %vm150_vm0, %v145_v8 }
  0xea   : > { %v223_v9 = vpop.f32.mrb[0].mxu0  ;;  %v229_v10 = vpop.f32.mrb[0].mxu1 }
  0xeb   : > { %234 = vst [vmem:[%s143_s21] sm:$0xff] %v223_v9  ;;  %236 = vst [vmem:[%s143_s21 + $0x10] sm:$0xff] %v229_v10  ;;  %v225_v11 = vpop.f32.mrb[1].mxu0  ;;  %v231_v12 = vpop.f32.mrb[1].mxu1 }
  0xec   : > { %235 = vst [vmem:[%s143_s21 + $0x8] sm:$0xff] %v225_v11  ;;  %237 = vst [vmem:[%s143_s21 + $0x18] sm:$0xff] %v231_v12 }
  0xed PF: > { %s12_s9 = sadd.s32 1, %s329_s9  }
  0xee   : > { %p9_p4 = scmp.ge.s32.totalorder %s12_s9, 4  }
  0xf0   :  { %11 = sbr.rel (!%p9_p4) target bundleno = 1 (0x1), region = 58 }

// kernel: _lambda_.4
= control target key start
LH: loop header
LB: loop body
LE: loop exit
PB: predicated region body
PF: predicated region fallthrough
CT: control target
= control target key end

     0   :  { %s849_s18 = smov 0   ;;  %s851_s19 = smov 0   ;;  %s1319_s0 = inlined_call_operand.vmem [shape: f32[2,136,128], index: 0, kind: input, shape index: {}]   ;;  %s1320_s1 = inlined_call_operand.vmem [shape: f32[2,136,128], index: 1, kind: input, shape index: {}]   ;;  %s1321_s2 = inlined_call_operand.vmem [shape: f32[136,128], index: 2, kind: input, shape index: {}]   ;;  %s1322_s3 = inlined_call_operand.vmem [shape: f32[136,128], index: 3, kind: input, shape index: {}]   ;;  %s1323_s4 = inlined_call_operand.vmem [shape: f32[2,136,128], index: 4, kind: output, shape index: {0}]   ;;  %s1324_s5 = inlined_call_operand.vmem [shape: f32[2,136,128], index: 5, kind: output, shape index: {1}]  }
   0x1   :  { %s853_s20 = smov 0  }
   0x2 LB: > { %s28_s21 = sadd.s32 1, %s813_s19  ;;  %p763_p0 = scmp.ge.s32.totalorder %s817_s20, 1  ;;  %s817_s20 = sphi %s853_s20, %s16_s20   ;;  %s813_s19 = sphi %s851_s19, %s1335_s19   ;;  %s809_s18 = sphi %s849_s18, %s1334_s18  }
   0x3   : > { %p30_p1 = scmp.ge.s32.totalorder %s28_s21, 2  ;;  %p252_p2 = scmp.lt.s32.totalorder %s817_s20, 3 }
   0x5   : > { %s1337_s21 = smov (%p30_p1, %s28_s21), 0  ;;  %p253_p3 = pnand %p763_p0, %p252_p2 }
   0x7   : > { %256 = sbr.rel (%p253_p3) target bundleno = 54 (0x36), region = 36 }
   0xe   : > { %p317_p4 = scmp.lt.s32.totalorder %s809_s18, 1  ;;  %v402_v0 = vld [vmem:[%s1321_s2] sm:$0xff]  ;;  %v878_v2 = vld [vmem:[%s1321_s2 + $0x8] sm:$0xff]  ;;  %v888_v4 = vld [vmem:[%s1321_s2 + $0x10] sm:$0xff] }
   0xf   : > { %v419_v1 = vld [vmem:[%s1322_s3] sm:$0xff]  ;;  %v883_v3 = vld [vmem:[%s1322_s3 + $0x8] sm:$0xff]  ;;  %v893_v5 = vld [vmem:[%s1322_s3 + $0x10] sm:$0xff] }
  0x10   : > { %s1339_s18 = smov (!%p317_p4, %s809_s18), 1  ;;  %v898_v6 = vld [vmem:[%s1321_s2 + $0x18] sm:$0xff]  ;;  %v920_v8 = vld [vmem:[%s1321_s2 + $0x20] sm:$0xff]  ;;  %v930_v10 = vld [vmem:[%s1321_s2 + $0x28] sm:$0xff] }
  0x11   : > { %s873_s26 = smul.u32 136, %s1339_s18  ;;  %v903_v7 = vld [vmem:[%s1322_s3 + $0x18] sm:$0xff]  ;;  %v925_v9 = vld [vmem:[%s1322_s3 + $0x20] sm:$0xff]  ;;  %v940_v14 = vld [vmem:[%s1322_s3 + $0x28] sm:$0xff] }
  0x12   : > { %v945_v15 = vld [vmem:[%s1321_s2 + $0x30] sm:$0xff]  ;;  %v966_v23 = vld [vmem:[%s1321_s2 + $0x38] sm:$0xff]  ;;  %v976_v25 = vld [vmem:[%s1321_s2 + $0x40] sm:$0xff] }
  0x13   : > { %s909_s16 = scalar_lea.vmem %s1319_s0, %s873_s26  ;;  %s915_s22 = scalar_lea.vmem %s1320_s1, %s873_s26  ;;  %v950_v16 = vld [vmem:[%s1322_s3 + $0x30] sm:$0xff]  ;;  %v971_v24 = vld [vmem:[%s1322_s3 + $0x38] sm:$0xff]  ;;  %v1004_v33 = vld [vmem:[%s1322_s3 + $0x40] sm:$0xff] }
  0x14   : > { %v368_v11 = vld [vmem:[%s909_s16] sm:$0xff]  ;;  %v935_v13 = vld [vmem:[%s909_s16 + $0x8] sm:$0xff]  ;;  %v958_v21 = vld [vmem:[%s909_s16 + $0x10] sm:$0xff]  ;;  %s984_s24 = scalar_lea.vmem %s1323_s4, %s873_s26  ;;  %s1122_s18 = scalar_lea.vmem %s1324_s5, %s873_s26 }
  0x15   : > { %v385_v12 = vld [vmem:[%s915_s22] sm:$0xff]  ;;  %v436_v17 = vmul.f32 %v402_v0, %v368_v11  ;;  %v953_v19 = vld [vmem:[%s915_s22 + $0x8] sm:$0xff]  ;;  %v437_v20 = vmul.f32 %v878_v2, %v935_v13  ;;  %v961_v22 = vld [vmem:[%s915_s22 + $0x10] sm:$0xff]  ;;  %v978_v26 = vmul.f32 %v419_v1, %v368_v11  ;;  %v438_v28 = vmul.f32 %v888_v4, %v958_v21 }
  0x16   : > { %v453_v18 = vmul.f32 %v419_v1, %v385_v12  ;;  %v454_v27 = vmul.f32 %v883_v3, %v953_v19  ;;  %v455_v29 = vmul.f32 %v893_v5, %v961_v22  ;;  %v993_v30 = vld [vmem:[%s909_s16 + $0x18] sm:$0xff]  ;;  %v999_v32 = vld [vmem:[%s909_s16 + $0x20] sm:$0xff]  ;;  %v1009_v34 = vld [vmem:[%s1321_s2 + $0x48] sm:$0xff]  ;;  %v521_v35 = vmul.f32 %v402_v0, %v385_v12 }
  0x17   : > { %v996_v31 = vld [vmem:[%s915_s22 + $0x18] sm:$0xff]  ;;  %v439_v37 = vmul.f32 %v898_v6, %v993_v30  ;;  %v1016_v39 = vld [vmem:[%s915_s22 + $0x20] sm:$0xff]  ;;  %v440_v40 = vmul.f32 %v920_v8, %v999_v32  ;;  %v1021_v41 = vld [vmem:[%s909_s16 + $0x28] sm:$0xff] }
  0x18   : > { %v470_v36 = vsub.f32 %v436_v17, %v453_v18  ;;  %v456_v38 = vmul.f32 %v903_v7, %v996_v31  ;;  %v1024_v42 = vld [vmem:[%s915_s22 + $0x28] sm:$0xff]  ;;  %v1034_v44 = vld [vmem:[%s1321_s2 + $0x50] sm:$0xff]  ;;  %v471_v45 = vsub.f32 %v437_v20, %v454_v27  ;;  %v472_v46 = vsub.f32 %v438_v28, %v455_v29  ;;  %v1047_v51 = vld [vmem:[%s909_s16 + $0x38] sm:$0xff] }
  0x19   : > { %v1029_v43 = vld [vmem:[%s1322_s3 + $0x48] sm:$0xff]  ;;  %v457_v47 = vmul.f32 %v925_v9, %v1016_v39  ;;  %v441_v48 = vmul.f32 %v930_v10, %v1021_v41  ;;  %v1041_v49 = vld [vmem:[%s909_s16 + $0x30] sm:$0xff]  ;;  %v458_v53 = vmul.f32 %v940_v14, %v1024_v42  ;;  %v1057_v56 = vld [vmem:[%s915_s22 + $0x38] sm:$0xff]  ;;  %v443_v60 = vmul.f32 %v966_v23, %v1047_v51 }
  0x1a   : > { %v1044_v50 = vld [vmem:[%s915_s22 + $0x30] sm:$0xff]  ;;  %487 = vst [vmem:[%s984_s24] sm:$0xff] %v470_v36  ;;  %v473_v52 = vsub.f32 %v439_v37, %v456_v38  ;;  %v442_v54 = vmul.f32 %v945_v15, %v1041_v49  ;;  %v1060_v57 = vld [vmem:[%s909_s16 + $0x40] sm:$0xff]  ;;  %488 = vst [vmem:[%s984_s24 + $0x8] sm:$0xff] %v471_v45  ;;  %v460_v61 = vmul.f32 %v971_v24, %v1057_v56 }
  0x1b   : > { %v459_v55 = vmul.f32 %v950_v16, %v1044_v50  ;;  %v1063_v58 = vld [vmem:[%s915_s22 + $0x40] sm:$0xff]  ;;  %489 = vst [vmem:[%s984_s24 + $0x10] sm:$0xff] %v472_v46  ;;  %v474_v59 = vsub.f32 %v440_v40, %v457_v47  ;;  %v444_v62 = vmul.f32 %v976_v25, %v1060_v57  ;;  %v1074_v63 = vld [vmem:[%s909_s16 + $0x48] sm:$0xff]  ;;  %v1080_v1 = vld [vmem:[%s909_s16 + $0x50] sm:$0xff]  ;;  %v475_v11 = vsub.f32 %v441_v48, %v458_v53 }
  0x1c   : > { %v1077_v0 = vld [vmem:[%s915_s22 + $0x48] sm:$0xff]  ;;  %490 = vst [vmem:[%s984_s24 + $0x18] sm:$0xff] %v473_v52  ;;  %v461_v17 = vmul.f32 %v1004_v33, %v1063_v58  ;;  %v445_v18 = vmul.f32 %v1009_v34, %v1074_v63  ;;  %v1088_v20 = vld [vmem:[%s915_s22 + $0x50] sm:$0xff]  ;;  %v1096_v28 = vld [vmem:[%s909_s16 + $0x58] sm:$0xff]  ;;  %v477_v29 = vsub.f32 %v443_v60, %v460_v61  ;;  %v446_v37 = vmul.f32 %v1034_v44, %v1080_v1 }
  0x1d   : > { %v476_v12 = vsub.f32 %v442_v54, %v459_v55  ;;  %v1093_v27 = vld [vmem:[%s1322_s3 + $0x50] sm:$0xff]  ;;  %491 = vst [vmem:[%s984_s24 + $0x20] sm:$0xff] %v474_v59  ;;  %v462_v36 = vmul.f32 %v1029_v43, %v1077_v0  ;;  %v1106_v40 = vld [vmem:[%s915_s22 + $0x58] sm:$0xff]  ;;  %492 = vst [vmem:[%s984_s24 + $0x28] sm:$0xff] %v475_v11  ;;  %v538_v59 = vadd.f32 %v521_v35, %v978_v26 }
  0x1e   : > { %v463_v38 = vmul.f32 %v1093_v27, %v1088_v20  ;;  %v1111_v45 = vld [vmem:[%s1321_s2 + $0x58] sm:$0xff]  ;;  %v478_v47 = vsub.f32 %v444_v62, %v461_v17  ;;  %v1131_v53 = vld [vmem:[%s909_s16 + $0x60] sm:$0xff]  ;;  %494 = vst [vmem:[%s984_s24 + $0x38] sm:$0xff] %v477_v29  ;;  %v1154_v17 = vld [vmem:[%s915_s22 + $0x68] sm:$0xff]  ;;  %v505_v26 = vmul.f32 %v883_v3, %v935_v13  ;;  %v522_v3 = vmul.f32 %v878_v2, %v953_v19 }
  0x1f   : > { %v1116_v46 = vld [vmem:[%s1322_s3 + $0x58] sm:$0xff]  ;;  %493 = vst [vmem:[%s984_s24 + $0x30] sm:$0xff] %v476_v12  ;;  %v447_v48 = vmul.f32 %v1111_v45, %v1096_v28  ;;  %v1134_v54 = vld [vmem:[%s915_s22 + $0x60] sm:$0xff]  ;;  %v479_v60 = vsub.f32 %v445_v18, %v462_v36  ;;  %v1151_v12 = vld [vmem:[%s909_s16 + $0x68] sm:$0xff]  ;;  %v506_v13 = vmul.f32 %v893_v5, %v958_v21  ;;  %v523_v5 = vmul.f32 %v888_v4, %v961_v22 }
  0x20   : > { %v464_v52 = vmul.f32 %v1116_v46, %v1106_v40  ;;  %v1139_v55 = vld [vmem:[%s1321_s2 + $0x60] sm:$0xff]  ;;  %v480_v61 = vsub.f32 %v446_v37, %v463_v38  ;;  %495 = vst [vmem:[%s984_s24 + $0x40] sm:$0xff] %v478_v47  ;;  %v1164_v29 = vld [vmem:[%s1321_s2 + $0x68] sm:$0xff]  ;;  %v1172_v37 = vld [vmem:[%s909_s16 + $0x70] sm:$0xff]  ;;  %v507_v19 = vmul.f32 %v903_v7, %v993_v30  ;;  %v539_v7 = vadd.f32 %v522_v3, %v505_v26 }
  0x21   : > { %v1146_v62 = vld [vmem:[%s1322_s3 + $0x60] sm:$0xff]  ;;  %v448_v11 = vmul.f32 %v1139_v55, %v1131_v53  ;;  %1328 = vst [vmem:[#allocation2_spill] sm:$0xff] %v1164_v29  ;;  %v1169_v36 = vld [vmem:[%s1322_s3 + $0x68] sm:$0xff]  ;;  %555 = vst [vmem:[%s1122_s18] sm:$0xff] %v538_v59  ;;  %v449_v38 = vmul.f32 %v1164_v29, %v1151_v12 }
  0x22   : > { %v481_v35 = vsub.f32 %v447_v48, %v464_v52  ;;  %v465_v18 = vmul.f32 %v1146_v62, %v1134_v54  ;;  %496 = vst [vmem:[%s984_s24 + $0x48] sm:$0xff] %v479_v60  ;;  %497 = vst [vmem:[%s984_s24 + $0x50] sm:$0xff] %v480_v61  ;;  %v466_v47 = vmul.f32 %v1169_v36, %v1154_v17  ;;  %v1186_v48 = vld [vmem:[%s915_s22 + $0x70] sm:$0xff]  ;;  %v1208_v61 = vld [vmem:[%s909_s16 + $0x78] sm:$0xff] }
  0x23   : > { %1329 = vst [vmem:[#allocation3_spill] sm:$0xff] %v1186_v48  ;;  %v1191_v52 = vld [vmem:[%s1321_s2 + $0x70] sm:$0xff]  ;;  %v1211_v29 = vld [vmem:[%s915_s22 + $0x78] sm:$0xff]  ;;  %556 = vst [vmem:[%s1122_s18 + $0x8] sm:$0xff] %v539_v7 }
  0x24   : > { %1330 = vst [vmem:[#allocation4_spill] sm:$0xff] %v1191_v52  ;;  %v1196_v2 = vld [vmem:[%s1322_s3 + $0x70] sm:$0xff]  ;;  %498 = vst [vmem:[%s984_s24 + $0x58] sm:$0xff] %v481_v35  ;;  %v482_v21 = vsub.f32 %v448_v11, %v465_v18  ;;  %v450_v59 = vmul.f32 %v1191_v52, %v1172_v37  ;;  %v1216_v4 = vld [vmem:[%s1321_s2 + $0x78] sm:$0xff]  ;;  %v483_v22 = vsub.f32 %v449_v38, %v466_v47 }
  0x25   : > { %v467_v60 = vmul.f32 %v1196_v2, %v1186_v48  ;;  %v434_v30 = vld [vmem:[%s1322_s3 + $0x78] sm:$0xff]  ;;  %v451_v11 = vmul.f32 %v1216_v4, %v1208_v61  ;;  %v1224_v35 = vld [vmem:[%s909_s16 + $0x80] sm:$0xff]  ;;  %v540_v52 = vadd.f32 %v523_v5, %v506_v13  ;;  %v524_v48 = vmul.f32 %v898_v6, %v996_v31 }
  0x26   : > { %v1227_v18 = vld [vmem:[%s915_s22 + $0x80] sm:$0xff]  ;;  %499 = vst [vmem:[%s984_s24 + $0x60] sm:$0xff] %v482_v21  ;;  %v468_v3 = vmul.f32 %v434_v30, %v1211_v29  ;;  %v508_v13 = vmul.f32 %v925_v9, %v999_v32  ;;  %v525_v6 = vmul.f32 %v920_v8, %v1016_v39  ;;  %500 = vst [vmem:[%s984_s24 + $0x68] sm:$0xff] %v483_v22 }
  0x27   : > { %v484_v26 = vsub.f32 %v450_v59, %v467_v60  ;;  %v418_v38 = vld [vmem:[%s1321_s2 + $0x80] sm:$0xff]  ;;  %557 = vst [vmem:[%s1122_s18 + $0x10] sm:$0xff] %v540_v52  ;;  %v541_v21 = vadd.f32 %v524_v48, %v507_v19  ;;  %v509_v59 = vmul.f32 %v940_v14, %v1021_v41  ;;  %v526_v9 = vmul.f32 %v930_v10, %v1024_v42 }
  0x28   : > { %v435_v47 = vld [vmem:[%s1322_s3 + $0x80] sm:$0xff]  ;;  %v452_v31 = vmul.f32 %v418_v38, %v1224_v35  ;;  %v485_v60 = vsub.f32 %v451_v11, %v468_v3  ;;  %v542_v7 = vadd.f32 %v525_v6, %v508_v13  ;;  %v510_v8 = vmul.f32 %v950_v16, %v1041_v49 }
  0x29   : > { %v469_v5 = vmul.f32 %v435_v47, %v1227_v18  ;;  %501 = vst [vmem:[%s984_s24 + $0x70] sm:$0xff] %v484_v26  ;;  %558 = vst [vmem:[%s1122_s18 + $0x18] sm:$0xff] %v541_v21  ;;  %v527_v39 = vmul.f32 %v945_v15, %v1044_v50  ;;  %v511_v48 = vmul.f32 %v971_v24, %v1047_v51 }
  0x2a   : > { %v528_v14 = vmul.f32 %v966_v23, %v1057_v56  ;;  %502 = vst [vmem:[%s984_s24 + $0x78] sm:$0xff] %v485_v60  ;;  %559 = vst [vmem:[%s1122_s18 + $0x20] sm:$0xff] %v542_v7  ;;  %v543_v10 = vadd.f32 %v526_v9, %v509_v59  ;;  %v512_v16 = vmul.f32 %v1004_v33, %v1060_v57 }
  0x2b   : > { %v486_v32 = vsub.f32 %v452_v31, %v469_v5  ;;  %v529_v41 = vmul.f32 %v976_v25, %v1063_v58  ;;  %v513_v15 = vmul.f32 %v1029_v43, %v1074_v63  ;;  %v544_v24 = vadd.f32 %v527_v39, %v510_v8  ;;  %v1331_v63 = vld [vmem:[#allocation2_spill] sm:$0xff] }
  0x2c   : > { %v545_v42 = vadd.f32 %v528_v14, %v511_v48  ;;  %v530_v23 = vmul.f32 %v1009_v34, %v1077_v0  ;;  %v514_v49 = vmul.f32 %v1093_v27, %v1080_v1  ;;  %560 = vst [vmem:[%s1122_s18 + $0x28] sm:$0xff] %v543_v10  ;;  %v531_v33 = vmul.f32 %v1034_v44, %v1088_v20  ;;  %v1332_v27 = vld [vmem:[#allocation3_spill] sm:$0xff] }
  0x2d   : > { %503 = vst [vmem:[%s984_s24 + $0x80] sm:$0xff] %v486_v32  ;;  %v546_v50 = vadd.f32 %v529_v41, %v512_v16  ;;  %v515_v25 = vmul.f32 %v1116_v46, %v1096_v28  ;;  %v532_v43 = vmul.f32 %v1111_v45, %v1106_v40  ;;  %561 = vst [vmem:[%s1122_s18 + $0x30] sm:$0xff] %v544_v24  ;;  %v1333_v28 = vld [vmem:[#allocation4_spill] sm:$0xff] }
  0x2e   : > { %562 = vst [vmem:[%s1122_s18 + $0x38] sm:$0xff] %v545_v42  ;;  %v547_v34 = vadd.f32 %v530_v23, %v513_v15  ;;  %v516_v51 = vmul.f32 %v1146_v62, %v1131_v53  ;;  %v533_v56 = vmul.f32 %v1139_v55, %v1134_v54  ;;  %v517_v44 = vmul.f32 %v1169_v36, %v1151_v12 }
  0x2f   : > { %563 = vst [vmem:[%s1122_s18 + $0x40] sm:$0xff] %v546_v50  ;;  %v548_v57 = vadd.f32 %v531_v33, %v514_v49  ;;  %v549_v58 = vadd.f32 %v532_v43, %v515_v25  ;;  %v534_v0 = vmul.f32 %v1331_v63, %v1154_v17  ;;  %v518_v1 = vmul.f32 %v1196_v2, %v1172_v37 }
  0x30   : > { %564 = vst [vmem:[%s1122_s18 + $0x48] sm:$0xff] %v547_v34  ;;  %v550_v20 = vadd.f32 %v533_v56, %v516_v51  ;;  %v535_v40 = vmul.f32 %v1333_v28, %v1332_v27  ;;  %v519_v45 = vmul.f32 %v434_v30, %v1208_v61  ;;  %v536_v46 = vmul.f32 %v1216_v4, %v1211_v29 }
  0x31   : > { %565 = vst [vmem:[%s1122_s18 + $0x50] sm:$0xff] %v548_v57  ;;  %566 = vst [vmem:[%s1122_s18 + $0x58] sm:$0xff] %v549_v58  ;;  %v551_v53 = vadd.f32 %v534_v0, %v517_v44  ;;  %v520_v54 = vmul.f32 %v435_v47, %v1224_v35  ;;  %v537_v55 = vmul.f32 %v418_v38, %v1227_v18 }
  0x32   : > { %567 = vst [vmem:[%s1122_s18 + $0x60] sm:$0xff] %v550_v20  ;;  %v552_v62 = vadd.f32 %v535_v40, %v518_v1  ;;  %v553_v12 = vadd.f32 %v536_v46, %v519_v45 }
  0x33   : > { %568 = vst [vmem:[%s1122_s18 + $0x68] sm:$0xff] %v551_v53  ;;  %v554_v17 = vadd.f32 %v537_v55, %v520_v54 }
  0x34   : > { %569 = vst [vmem:[%s1122_s18 + $0x70] sm:$0xff] %v552_v62  ;;  %570 = vst [vmem:[%s1122_s18 + $0x78] sm:$0xff] %v553_v12 }
  0x35   : > { %571 = vst [vmem:[%s1122_s18 + $0x80] sm:$0xff] %v554_v17 }
  0x36 PF: > { %s16_s20 = sadd.s32 1, %s817_s20   ;;  %s1334_s18 = smov %s813_s19 }
  0x37   : > { %p13_p5 = scmp.ge.s32.totalorder %s16_s20, 4   ;;  %s1335_s19 = smov %s1337_s21 }
  0x39   :  { %15 = sbr.rel (!%p13_p5) target bundleno = 2 (0x2), region = 87 }

// kernel: reverse.1
= control target key start
LH: loop header
LB: loop body
LE: loop exit
PB: predicated region body
PF: predicated region fallthrough
CT: control target
= control target key end

     0   :  { %s1448_s0 = inlined_call_operand.vmem [shape: f32[2,32,32,15], index: 0, kind: input, shape index: {}]   ;;  %s1449_s1 = inlined_call_operand.vmem [shape: f32[2,32,32,15], index: 1, kind: output, shape index: {}]  }
   0x1   :  { %v480_v0 = vld [vmem:[%s1448_s0 + $0x1c0] sm:$0xff]  ;;  %v538_v30 = vld [vmem:[%s1448_s0 + $0x1c8] sm:$0xff]  ;;  %v598_v60 = vld [vmem:[%s1448_s0 + $0x1d0] sm:$0xff] }
   0x2   :  { %v481_v1 = vld [vmem:[%s1448_s0 + $0x3a0] sm:$0xff]  ;;  %4 = vst [vmem:[%s1449_s1] sm:$0xff] %v480_v0  ;;  %v540_v31 = vld [vmem:[%s1448_s0 + $0x3a8] sm:$0xff]  ;;  %539 = vst [vmem:[%s1449_s1 + $0x8] sm:$0xff] %v538_v30 }
   0x3   :  { %v483_v2 = vld [vmem:[%s1448_s0 + $0x1a0] sm:$0xff]  ;;  %482 = vst [vmem:[%s1449_s1 + $0x1e0] sm:$0xff] %v481_v1  ;;  %v542_v32 = vld [vmem:[%s1448_s0 + $0x1a8] sm:$0xff]  ;;  %541 = vst [vmem:[%s1449_s1 + $0x1e8] sm:$0xff] %v540_v31 }
   0x4   :  { %484 = vst [vmem:[%s1449_s1 + $0x20] sm:$0xff] %v483_v2  ;;  %v485_v3 = vld [vmem:[%s1448_s0 + $0x380] sm:$0xff]  ;;  %543 = vst [vmem:[%s1449_s1 + $0x28] sm:$0xff] %v542_v32  ;;  %v544_v33 = vld [vmem:[%s1448_s0 + $0x388] sm:$0xff] }
   0x5   :  { %v487_v4 = vld [vmem:[%s1448_s0 + $0x180] sm:$0xff]  ;;  %486 = vst [vmem:[%s1449_s1 + $0x200] sm:$0xff] %v485_v3  ;;  %v546_v34 = vld [vmem:[%s1448_s0 + $0x188] sm:$0xff]  ;;  %545 = vst [vmem:[%s1449_s1 + $0x208] sm:$0xff] %v544_v33 }
   0x6   :  { %v489_v5 = vld [vmem:[%s1448_s0 + $0x360] sm:$0xff]  ;;  %488 = vst [vmem:[%s1449_s1 + $0x40] sm:$0xff] %v487_v4  ;;  %v548_v35 = vld [vmem:[%s1448_s0 + $0x368] sm:$0xff]  ;;  %547 = vst [vmem:[%s1449_s1 + $0x48] sm:$0xff] %v546_v34 }
   0x7   :  { %490 = vst [vmem:[%s1449_s1 + $0x220] sm:$0xff] %v489_v5  ;;  %v491_v6 = vld [vmem:[%s1448_s0 + $0x160] sm:$0xff]  ;;  %549 = vst [vmem:[%s1449_s1 + $0x228] sm:$0xff] %v548_v35  ;;  %v550_v36 = vld [vmem:[%s1448_s0 + $0x168] sm:$0xff] }
   0x8   :  { %v493_v7 = vld [vmem:[%s1448_s0 + $0x340] sm:$0xff]  ;;  %492 = vst [vmem:[%s1449_s1 + $0x60] sm:$0xff] %v491_v6  ;;  %v552_v37 = vld [vmem:[%s1448_s0 + $0x348] sm:$0xff]  ;;  %551 = vst [vmem:[%s1449_s1 + $0x68] sm:$0xff] %v550_v36 }
   0x9   :  { %v495_v8 = vld [vmem:[%s1448_s0 + $0x140] sm:$0xff]  ;;  %494 = vst [vmem:[%s1449_s1 + $0x240] sm:$0xff] %v493_v7  ;;  %v554_v38 = vld [vmem:[%s1448_s0 + $0x148] sm:$0xff]  ;;  %553 = vst [vmem:[%s1449_s1 + $0x248] sm:$0xff] %v552_v37 }
   0xa   :  { %496 = vst [vmem:[%s1449_s1 + $0x80] sm:$0xff] %v495_v8  ;;  %v497_v9 = vld [vmem:[%s1448_s0 + $0x320] sm:$0xff]  ;;  %555 = vst [vmem:[%s1449_s1 + $0x88] sm:$0xff] %v554_v38  ;;  %v556_v39 = vld [vmem:[%s1448_s0 + $0x328] sm:$0xff] }
   0xb   :  { %v499_v10 = vld [vmem:[%s1448_s0 + $0x120] sm:$0xff]  ;;  %498 = vst [vmem:[%s1449_s1 + $0x260] sm:$0xff] %v497_v9  ;;  %v558_v40 = vld [vmem:[%s1448_s0 + $0x128] sm:$0xff]  ;;  %557 = vst [vmem:[%s1449_s1 + $0x268] sm:$0xff] %v556_v39 }
   0xc   :  { %v501_v11 = vld [vmem:[%s1448_s0 + $0x300] sm:$0xff]  ;;  %500 = vst [vmem:[%s1449_s1 + $0xa0] sm:$0xff] %v499_v10  ;;  %v560_v41 = vld [vmem:[%s1448_s0 + $0x308] sm:$0xff]  ;;  %559 = vst [vmem:[%s1449_s1 + $0xa8] sm:$0xff] %v558_v40 }
   0xd   :  { %502 = vst [vmem:[%s1449_s1 + $0x280] sm:$0xff] %v501_v11  ;;  %v503_v12 = vld [vmem:[%s1448_s0 + $0x100] sm:$0xff]  ;;  %561 = vst [vmem:[%s1449_s1 + $0x288] sm:$0xff] %v560_v41  ;;  %v562_v42 = vld [vmem:[%s1448_s0 + $0x108] sm:$0xff] }
   0xe   :  { %v505_v13 = vld [vmem:[%s1448_s0 + $0x2e0] sm:$0xff]  ;;  %504 = vst [vmem:[%s1449_s1 + $0xc0] sm:$0xff] %v503_v12  ;;  %v564_v43 = vld [vmem:[%s1448_s0 + $0x2e8] sm:$0xff]  ;;  %563 = vst [vmem:[%s1449_s1 + $0xc8] sm:$0xff] %v562_v42 }
   0xf   :  { %v507_v14 = vld [vmem:[%s1448_s0 + $0xe0] sm:$0xff]  ;;  %506 = vst [vmem:[%s1449_s1 + $0x2a0] sm:$0xff] %v505_v13  ;;  %v566_v44 = vld [vmem:[%s1448_s0 + $0xe8] sm:$0xff]  ;;  %565 = vst [vmem:[%s1449_s1 + $0x2a8] sm:$0xff] %v564_v43 }
  0x10   :  { %508 = vst [vmem:[%s1449_s1 + $0xe0] sm:$0xff] %v507_v14  ;;  %v509_v15 = vld [vmem:[%s1448_s0 + $0x2c0] sm:$0xff]  ;;  %567 = vst [vmem:[%s1449_s1 + $0xe8] sm:$0xff] %v566_v44  ;;  %v568_v45 = vld [vmem:[%s1448_s0 + $0x2c8] sm:$0xff] }
  0x11   :  { %v511_v16 = vld [vmem:[%s1448_s0 + $0xc0] sm:$0xff]  ;;  %510 = vst [vmem:[%s1449_s1 + $0x2c0] sm:$0xff] %v509_v15  ;;  %v570_v46 = vld [vmem:[%s1448_s0 + $0xc8] sm:$0xff]  ;;  %569 = vst [vmem:[%s1449_s1 + $0x2c8] sm:$0xff] %v568_v45 }
  0x12   :  { %v513_v17 = vld [vmem:[%s1448_s0 + $0x2a0] sm:$0xff]  ;;  %512 = vst [vmem:[%s1449_s1 + $0x100] sm:$0xff] %v511_v16  ;;  %v572_v47 = vld [vmem:[%s1448_s0 + $0x2a8] sm:$0xff]  ;;  %571 = vst [vmem:[%s1449_s1 + $0x108] sm:$0xff] %v570_v46 }
  0x13   :  { %514 = vst [vmem:[%s1449_s1 + $0x2e0] sm:$0xff] %v513_v17  ;;  %v515_v18 = vld [vmem:[%s1448_s0 + $0xa0] sm:$0xff]  ;;  %573 = vst [vmem:[%s1449_s1 + $0x2e8] sm:$0xff] %v572_v47  ;;  %v574_v48 = vld [vmem:[%s1448_s0 + $0xa8] sm:$0xff] }
  0x14   :  { %v517_v19 = vld [vmem:[%s1448_s0 + $0x280] sm:$0xff]  ;;  %516 = vst [vmem:[%s1449_s1 + $0x120] sm:$0xff] %v515_v18  ;;  %v576_v49 = vld [vmem:[%s1448_s0 + $0x288] sm:$0xff]  ;;  %575 = vst [vmem:[%s1449_s1 + $0x128] sm:$0xff] %v574_v48 }
  0x15   :  { %v519_v20 = vld [vmem:[%s1448_s0 + $0x80] sm:$0xff]  ;;  %518 = vst [vmem:[%s1449_s1 + $0x300] sm:$0xff] %v517_v19  ;;  %v578_v50 = vld [vmem:[%s1448_s0 + $0x88] sm:$0xff]  ;;  %577 = vst [vmem:[%s1449_s1 + $0x308] sm:$0xff] %v576_v49 }
  0x16   :  { %520 = vst [vmem:[%s1449_s1 + $0x140] sm:$0xff] %v519_v20  ;;  %v521_v21 = vld [vmem:[%s1448_s0 + $0x260] sm:$0xff]  ;;  %579 = vst [vmem:[%s1449_s1 + $0x148] sm:$0xff] %v578_v50  ;;  %v580_v51 = vld [vmem:[%s1448_s0 + $0x268] sm:$0xff] }
  0x17   :  { %v523_v22 = vld [vmem:[%s1448_s0 + $0x60] sm:$0xff]  ;;  %522 = vst [vmem:[%s1449_s1 + $0x320] sm:$0xff] %v521_v21  ;;  %v582_v52 = vld [vmem:[%s1448_s0 + $0x68] sm:$0xff]  ;;  %581 = vst [vmem:[%s1449_s1 + $0x328] sm:$0xff] %v580_v51 }
  0x18   :  { %v525_v23 = vld [vmem:[%s1448_s0 + $0x240] sm:$0xff]  ;;  %524 = vst [vmem:[%s1449_s1 + $0x160] sm:$0xff] %v523_v22  ;;  %v584_v53 = vld [vmem:[%s1448_s0 + $0x248] sm:$0xff]  ;;  %583 = vst [vmem:[%s1449_s1 + $0x168] sm:$0xff] %v582_v52 }
  0x19   :  { %526 = vst [vmem:[%s1449_s1 + $0x340] sm:$0xff] %v525_v23  ;;  %v527_v24 = vld [vmem:[%s1448_s0 + $0x40] sm:$0xff]  ;;  %585 = vst [vmem:[%s1449_s1 + $0x348] sm:$0xff] %v584_v53  ;;  %v586_v54 = vld [vmem:[%s1448_s0 + $0x48] sm:$0xff] }
  0x1a   :  { %v529_v25 = vld [vmem:[%s1448_s0 + $0x220] sm:$0xff]  ;;  %528 = vst [vmem:[%s1449_s1 + $0x180] sm:$0xff] %v527_v24  ;;  %v588_v55 = vld [vmem:[%s1448_s0 + $0x228] sm:$0xff]  ;;  %587 = vst [vmem:[%s1449_s1 + $0x188] sm:$0xff] %v586_v54 }
  0x1b   :  { %v531_v26 = vld [vmem:[%s1448_s0 + $0x20] sm:$0xff]  ;;  %530 = vst [vmem:[%s1449_s1 + $0x360] sm:$0xff] %v529_v25  ;;  %v590_v56 = vld [vmem:[%s1448_s0 + $0x28] sm:$0xff]  ;;  %589 = vst [vmem:[%s1449_s1 + $0x368] sm:$0xff] %v588_v55 }
  0x1c   :  { %532 = vst [vmem:[%s1449_s1 + $0x1a0] sm:$0xff] %v531_v26  ;;  %v533_v27 = vld [vmem:[%s1448_s0 + $0x200] sm:$0xff]  ;;  %591 = vst [vmem:[%s1449_s1 + $0x1a8] sm:$0xff] %v590_v56  ;;  %v592_v57 = vld [vmem:[%s1448_s0 + $0x208] sm:$0xff] }
  0x1d   :  { %v113_v28 = vld [vmem:[%s1448_s0] sm:$0xff]  ;;  %534 = vst [vmem:[%s1449_s1 + $0x380] sm:$0xff] %v533_v27  ;;  %v594_v58 = vld [vmem:[%s1448_s0 + $0x8] sm:$0xff]  ;;  %593 = vst [vmem:[%s1449_s1 + $0x388] sm:$0xff] %v592_v57 }
  0x1e   :  { %v536_v29 = vld [vmem:[%s1448_s0 + $0x1e0] sm:$0xff]  ;;  %535 = vst [vmem:[%s1449_s1 + $0x1c0] sm:$0xff] %v113_v28  ;;  %v596_v59 = vld [vmem:[%s1448_s0 + $0x1e8] sm:$0xff]  ;;  %595 = vst [vmem:[%s1449_s1 + $0x1c8] sm:$0xff] %v594_v58 }
  0x1f   :  { %537 = vst [vmem:[%s1449_s1 + $0x3a0] sm:$0xff] %v536_v29  ;;  %597 = vst [vmem:[%s1449_s1 + $0x3a8] sm:$0xff] %v596_v59  ;;  %v600_v61 = vld [vmem:[%s1448_s0 + $0x3b0] sm:$0xff]  ;;  %v658_v26 = vld [vmem:[%s1448_s0 + $0x1d8] sm:$0xff] }
  0x20   :  { %v602_v62 = vld [vmem:[%s1448_s0 + $0x1b0] sm:$0xff]  ;;  %599 = vst [vmem:[%s1449_s1 + $0x10] sm:$0xff] %v598_v60  ;;  %601 = vst [vmem:[%s1449_s1 + $0x1f0] sm:$0xff] %v600_v61  ;;  %v660_v27 = vld [vmem:[%s1448_s0 + $0x3b8] sm:$0xff] }
  0x21   :  { %603 = vst [vmem:[%s1449_s1 + $0x30] sm:$0xff] %v602_v62  ;;  %v604_v63 = vld [vmem:[%s1448_s0 + $0x390] sm:$0xff]  ;;  %v662_v28 = vld [vmem:[%s1448_s0 + $0x1b8] sm:$0xff]  ;;  %659 = vst [vmem:[%s1449_s1 + $0x18] sm:$0xff] %v658_v26 }
  0x22   :  { %v606_v0 = vld [vmem:[%s1448_s0 + $0x190] sm:$0xff]  ;;  %605 = vst [vmem:[%s1449_s1 + $0x210] sm:$0xff] %v604_v63  ;;  %661 = vst [vmem:[%s1449_s1 + $0x1f8] sm:$0xff] %v660_v27  ;;  %v664_v29 = vld [vmem:[%s1448_s0 + $0x398] sm:$0xff] }
  0x23   :  { %v608_v1 = vld [vmem:[%s1448_s0 + $0x370] sm:$0xff]  ;;  %607 = vst [vmem:[%s1449_s1 + $0x50] sm:$0xff] %v606_v0  ;;  %663 = vst [vmem:[%s1449_s1 + $0x38] sm:$0xff] %v662_v28  ;;  %v666_v30 = vld [vmem:[%s1448_s0 + $0x198] sm:$0xff] }
  0x24   :  { %609 = vst [vmem:[%s1449_s1 + $0x230] sm:$0xff] %v608_v1  ;;  %v610_v2 = vld [vmem:[%s1448_s0 + $0x170] sm:$0xff]  ;;  %v668_v31 = vld [vmem:[%s1448_s0 + $0x378] sm:$0xff]  ;;  %665 = vst [vmem:[%s1449_s1 + $0x218] sm:$0xff] %v664_v29 }
  0x25   :  { %v612_v3 = vld [vmem:[%s1448_s0 + $0x350] sm:$0xff]  ;;  %611 = vst [vmem:[%s1449_s1 + $0x70] sm:$0xff] %v610_v2  ;;  %667 = vst [vmem:[%s1449_s1 + $0x58] sm:$0xff] %v666_v30  ;;  %v670_v32 = vld [vmem:[%s1448_s0 + $0x178] sm:$0xff] }
  0x26   :  { %v614_v4 = vld [vmem:[%s1448_s0 + $0x150] sm:$0xff]  ;;  %613 = vst [vmem:[%s1449_s1 + $0x250] sm:$0xff] %v612_v3  ;;  %669 = vst [vmem:[%s1449_s1 + $0x238] sm:$0xff] %v668_v31  ;;  %v672_v33 = vld [vmem:[%s1448_s0 + $0x358] sm:$0xff] }
  0x27   :  { %615 = vst [vmem:[%s1449_s1 + $0x90] sm:$0xff] %v614_v4  ;;  %v616_v5 = vld [vmem:[%s1448_s0 + $0x330] sm:$0xff]  ;;  %v674_v34 = vld [vmem:[%s1448_s0 + $0x158] sm:$0xff]  ;;  %671 = vst [vmem:[%s1449_s1 + $0x78] sm:$0xff] %v670_v32 }
  0x28   :  { %v618_v6 = vld [vmem:[%s1448_s0 + $0x130] sm:$0xff]  ;;  %617 = vst [vmem:[%s1449_s1 + $0x270] sm:$0xff] %v616_v5  ;;  %673 = vst [vmem:[%s1449_s1 + $0x258] sm:$0xff] %v672_v33  ;;  %v676_v35 = vld [vmem:[%s1448_s0 + $0x338] sm:$0xff] }
  0x29   :  { %v620_v7 = vld [vmem:[%s1448_s0 + $0x310] sm:$0xff]  ;;  %619 = vst [vmem:[%s1449_s1 + $0xb0] sm:$0xff] %v618_v6  ;;  %675 = vst [vmem:[%s1449_s1 + $0x98] sm:$0xff] %v674_v34  ;;  %v678_v36 = vld [vmem:[%s1448_s0 + $0x138] sm:$0xff] }
  0x2a   :  { %621 = vst [vmem:[%s1449_s1 + $0x290] sm:$0xff] %v620_v7  ;;  %v622_v8 = vld [vmem:[%s1448_s0 + $0x110] sm:$0xff]  ;;  %v680_v37 = vld [vmem:[%s1448_s0 + $0x318] sm:$0xff]  ;;  %677 = vst [vmem:[%s1449_s1 + $0x278] sm:$0xff] %v676_v35 }
  0x2b   :  { %v624_v9 = vld [vmem:[%s1448_s0 + $0x2f0] sm:$0xff]  ;;  %623 = vst [vmem:[%s1449_s1 + $0xd0] sm:$0xff] %v622_v8  ;;  %679 = vst [vmem:[%s1449_s1 + $0xb8] sm:$0xff] %v678_v36  ;;  %v682_v38 = vld [vmem:[%s1448_s0 + $0x118] sm:$0xff] }
  0x2c   :  { %v626_v10 = vld [vmem:[%s1448_s0 + $0xf0] sm:$0xff]  ;;  %625 = vst [vmem:[%s1449_s1 + $0x2b0] sm:$0xff] %v624_v9  ;;  %681 = vst [vmem:[%s1449_s1 + $0x298] sm:$0xff] %v680_v37  ;;  %v684_v39 = vld [vmem:[%s1448_s0 + $0x2f8] sm:$0xff] }
  0x2d   :  { %627 = vst [vmem:[%s1449_s1 + $0xf0] sm:$0xff] %v626_v10  ;;  %v628_v11 = vld [vmem:[%s1448_s0 + $0x2d0] sm:$0xff]  ;;  %v686_v40 = vld [vmem:[%s1448_s0 + $0xf8] sm:$0xff]  ;;  %683 = vst [vmem:[%s1449_s1 + $0xd8] sm:$0xff] %v682_v38 }
  0x2e   :  { %v630_v12 = vld [vmem:[%s1448_s0 + $0xd0] sm:$0xff]  ;;  %629 = vst [vmem:[%s1449_s1 + $0x2d0] sm:$0xff] %v628_v11  ;;  %685 = vst [vmem:[%s1449_s1 + $0x2b8] sm:$0xff] %v684_v39  ;;  %v688_v41 = vld [vmem:[%s1448_s0 + $0x2d8] sm:$0xff] }
  0x2f   :  { %v632_v13 = vld [vmem:[%s1448_s0 + $0x2b0] sm:$0xff]  ;;  %631 = vst [vmem:[%s1449_s1 + $0x110] sm:$0xff] %v630_v12  ;;  %687 = vst [vmem:[%s1449_s1 + $0xf8] sm:$0xff] %v686_v40  ;;  %v690_v42 = vld [vmem:[%s1448_s0 + $0xd8] sm:$0xff] }
  0x30   :  { %633 = vst [vmem:[%s1449_s1 + $0x2f0] sm:$0xff] %v632_v13  ;;  %v634_v14 = vld [vmem:[%s1448_s0 + $0xb0] sm:$0xff]  ;;  %v692_v43 = vld [vmem:[%s1448_s0 + $0x2b8] sm:$0xff]  ;;  %689 = vst [vmem:[%s1449_s1 + $0x2d8] sm:$0xff] %v688_v41 }
  0x31   :  { %v636_v15 = vld [vmem:[%s1448_s0 + $0x290] sm:$0xff]  ;;  %635 = vst [vmem:[%s1449_s1 + $0x130] sm:$0xff] %v634_v14  ;;  %691 = vst [vmem:[%s1449_s1 + $0x118] sm:$0xff] %v690_v42  ;;  %v694_v44 = vld [vmem:[%s1448_s0 + $0xb8] sm:$0xff] }
  0x32   :  { %v638_v16 = vld [vmem:[%s1448_s0 + $0x90] sm:$0xff]  ;;  %637 = vst [vmem:[%s1449_s1 + $0x310] sm:$0xff] %v636_v15  ;;  %693 = vst [vmem:[%s1449_s1 + $0x2f8] sm:$0xff] %v692_v43  ;;  %v696_v45 = vld [vmem:[%s1448_s0 + $0x298] sm:$0xff] }
  0x33   :  { %639 = vst [vmem:[%s1449_s1 + $0x150] sm:$0xff] %v638_v16  ;;  %v640_v17 = vld [vmem:[%s1448_s0 + $0x270] sm:$0xff]  ;;  %v698_v46 = vld [vmem:[%s1448_s0 + $0x98] sm:$0xff]  ;;  %695 = vst [vmem:[%s1449_s1 + $0x138] sm:$0xff] %v694_v44 }
  0x34   :  { %v642_v18 = vld [vmem:[%s1448_s0 + $0x70] sm:$0xff]  ;;  %641 = vst [vmem:[%s1449_s1 + $0x330] sm:$0xff] %v640_v17  ;;  %697 = vst [vmem:[%s1449_s1 + $0x318] sm:$0xff] %v696_v45  ;;  %v700_v47 = vld [vmem:[%s1448_s0 + $0x278] sm:$0xff] }
  0x35   :  { %v644_v19 = vld [vmem:[%s1448_s0 + $0x250] sm:$0xff]  ;;  %643 = vst [vmem:[%s1449_s1 + $0x170] sm:$0xff] %v642_v18  ;;  %699 = vst [vmem:[%s1449_s1 + $0x158] sm:$0xff] %v698_v46  ;;  %v702_v48 = vld [vmem:[%s1448_s0 + $0x78] sm:$0xff] }
  0x36   :  { %645 = vst [vmem:[%s1449_s1 + $0x350] sm:$0xff] %v644_v19  ;;  %v646_v20 = vld [vmem:[%s1448_s0 + $0x50] sm:$0xff]  ;;  %v704_v49 = vld [vmem:[%s1448_s0 + $0x258] sm:$0xff]  ;;  %701 = vst [vmem:[%s1449_s1 + $0x338] sm:$0xff] %v700_v47 }
  0x37   :  { %v648_v21 = vld [vmem:[%s1448_s0 + $0x230] sm:$0xff]  ;;  %647 = vst [vmem:[%s1449_s1 + $0x190] sm:$0xff] %v646_v20  ;;  %703 = vst [vmem:[%s1449_s1 + $0x178] sm:$0xff] %v702_v48  ;;  %v706_v50 = vld [vmem:[%s1448_s0 + $0x58] sm:$0xff] }
  0x38   :  { %v650_v22 = vld [vmem:[%s1448_s0 + $0x30] sm:$0xff]  ;;  %649 = vst [vmem:[%s1449_s1 + $0x370] sm:$0xff] %v648_v21  ;;  %705 = vst [vmem:[%s1449_s1 + $0x358] sm:$0xff] %v704_v49  ;;  %v708_v51 = vld [vmem:[%s1448_s0 + $0x238] sm:$0xff] }
  0x39   :  { %651 = vst [vmem:[%s1449_s1 + $0x1b0] sm:$0xff] %v650_v22  ;;  %v652_v23 = vld [vmem:[%s1448_s0 + $0x210] sm:$0xff]  ;;  %v710_v52 = vld [vmem:[%s1448_s0 + $0x38] sm:$0xff]  ;;  %707 = vst [vmem:[%s1449_s1 + $0x198] sm:$0xff] %v706_v50 }
  0x3a   :  { %v654_v24 = vld [vmem:[%s1448_s0 + $0x10] sm:$0xff]  ;;  %653 = vst [vmem:[%s1449_s1 + $0x390] sm:$0xff] %v652_v23  ;;  %709 = vst [vmem:[%s1449_s1 + $0x378] sm:$0xff] %v708_v51  ;;  %v712_v53 = vld [vmem:[%s1448_s0 + $0x218] sm:$0xff] }
  0x3b   :  { %v656_v25 = vld [vmem:[%s1448_s0 + $0x1f0] sm:$0xff]  ;;  %655 = vst [vmem:[%s1449_s1 + $0x1d0] sm:$0xff] %v654_v24  ;;  %711 = vst [vmem:[%s1449_s1 + $0x1b8] sm:$0xff] %v710_v52  ;;  %v714_v54 = vld [vmem:[%s1448_s0 + $0x18] sm:$0xff] }
  0x3c   :  { %657 = vst [vmem:[%s1449_s1 + $0x3b0] sm:$0xff] %v656_v25  ;;  %v716_v55 = vld [vmem:[%s1448_s0 + $0x1f8] sm:$0xff]  ;;  %713 = vst [vmem:[%s1449_s1 + $0x398] sm:$0xff] %v712_v53 }
  0x3d   :  { %715 = vst [vmem:[%s1449_s1 + $0x1d8] sm:$0xff] %v714_v54  ;;  %717 = vst [vmem:[%s1449_s1 + $0x3b8] sm:$0xff] %v716_v55 }

</bundles_post_ra>
